<compile_context>
chip_gen: v5e
topology: v5e:2x2
jax: 0.10.0
libtpu: 0.0.40
codegen_flags: <defaults>
</compile_context>

<pallas_src>
import jax
import jax.numpy as jnp
from jax.experimental import pallas as pl
from jax.experimental.pallas import tpu as pltpu


def _bahdanau_kernel(q_ref, k_ref,
                     waT_ref, wa_b_ref,
                     uaT_ref, ua_b_ref,
                     va_row_ref, va_b_ref,
                     ctx_ref, w_ref):
    TB, S, H = k_ref.shape

    q = q_ref[...]                 # (TB, H)
    k = k_ref[...]                 # (TB, S, H)

    # nn.Linear with host-pre-transposed (in, out) weights: y = x @ W^T + b,
    # no in-kernel transposes of loop-invariant operands.
    qW = (jnp.dot(q, waT_ref[...], preferred_element_type=jnp.float32)
          + wa_b_ref[...])                                                   # (TB, H)
    kU = (jnp.dot(k.reshape(TB * S, H), uaT_ref[...],
                  preferred_element_type=jnp.float32)
          + ua_b_ref[...])                                                   # (TB*S, H)

    t = jnp.tanh(kU.reshape(TB, S, H) + qW[:, None, :])                      # (TB, S, H)

    # Va projection is rank-1: lane reduction instead of t.T / 1-column matmul.
    scores = (jnp.sum(t * va_row_ref[...][None, :, :], axis=-1)
              + va_b_ref[...])                                               # (TB, S)

    # Numerically stable softmax over the key axis.
    m = jnp.max(scores, axis=-1, keepdims=True)
    e = jnp.exp(scores - m)
    w = e * pl.reciprocal(jnp.sum(e, axis=-1, keepdims=True), approx=True)   # (TB, S)

    # context = weights @ keys, batched over TB.
    ctx = jnp.einsum('bqs,bsh->bqh', w[:, None, :], k,
                     preferred_element_type=jnp.float32)                     # (TB, 1, H)

    ctx_ref[...] = ctx[:, 0, :].astype(ctx_ref.dtype)
    w_ref[...] = w.astype(w_ref.dtype)


def _pick_tb(B, S, H, itemsize=4, vmem_budget=4 * 1024 * 1024):
    """Largest legal batch tile: divides B, is either B itself or a multiple of 8
    (sublane tile), and keeps the double-buffered per-step blocks well inside VMEM."""
    per_b = (S * H + 2 * H + S) * itemsize * 2      # keys + q + outputs, x2 buffers
    cap = max(1, vmem_budget // max(per_b, 1))
    best = None
    for d in range(1, B + 1):
        if B % d == 0 and (d == B or d % 8 == 0) and d <= cap:
            best = d
    return best if best is not None else B


def bahdanau_attention(query, keys, params, *, tb=None):
    """query: (B, 1, H), keys: (B, S, H); returns (context (B,1,H), weights (B,1,S))."""
    B, q_len, H = query.shape
    assert q_len == 1
    Bk, S, Hk = keys.shape
    assert Bk == B and Hk == H
    wa_w, wa_b, ua_w, ua_b, va_w, va_b = params

    # Host-side, one-time prep: pre-transpose weights to (in, out) layout and
    # shape biases as 2-D rows for clean VMEM layout / broadcasting.
    waT = wa_w.T                      # (H, H)
    uaT = ua_w.T                      # (H, H)
    va_row = va_w.reshape(1, H)       # row vector for the lane-reduction projection
    wa_b2 = wa_b.reshape(1, H)
    ua_b2 = ua_b.reshape(1, H)
    va_b2 = va_b.reshape(1, 1)

    q2 = query.reshape(B, H)          # drop the unit query-length dim outside the kernel

    if tb is None:
        tb = _pick_tb(B, S, H, query.dtype.itemsize)
    assert B % tb == 0
    nb = B // tb

    invariant = lambda shape: pl.BlockSpec(shape, lambda i: tuple(0 for _ in shape))

    grid_spec = pltpu.PrefetchScalarGridSpec(
        num_scalar_prefetch=0,
        grid=(nb,),
        in_specs=[
            pl.BlockSpec((tb, H), lambda i: (i, 0)),        # query  (B, H)
            pl.BlockSpec((tb, S, H), lambda i: (i, 0, 0)),  # keys   (B, S, H)
            invariant((H, H)),                              # Wa^T
            invariant((1, H)),                              # Wa bias
            invariant((H, H)),                              # Ua^T
            invariant((1, H)),                              # Ua bias
            invariant((1, H)),                              # Va row
            invariant((1, 1)),                              # Va bias
        ],
        out_specs=[
            pl.BlockSpec((tb, H), lambda i: (i, 0)),        # context (B, H)
            pl.BlockSpec((tb, S), lambda i: (i, 0)),        # weights (B, S)
        ],
    )

    out_shape = (
        jax.ShapeDtypeStruct((B, H), query.dtype),
        jax.ShapeDtypeStruct((B, S), query.dtype),
    )

    ctx2, w2 = pl.pallas_call(
        _bahdanau_kernel,
        grid_spec=grid_spec,
        out_shape=out_shape,
        compiler_params=pltpu.CompilerParams(
            dimension_semantics=("parallel",)),
    )(q2, keys, waT, wa_b2, uaT, ua_b2, va_row, va_b2)

    return ctx2.reshape(B, 1, H), w2.reshape(B, 1, S)


def bahdanau_reference(query, keys, params):
    wa_w, wa_b, ua_w, ua_b, va_w, va_b = params
    qW = query @ wa_w.T + wa_b                 # (B, 1, H)
    kU = keys @ ua_w.T + ua_b                  # (B, S, H)
    t = jnp.tanh(qW + kU)                      # (B, S, H)
    scores = t @ va_w.T + va_b                 # (B, S, 1)
    scores = jnp.swapaxes(scores, 1, 2)        # (B, 1, S)  == squeeze(2).unsqueeze(1)
    weights = jax.nn.softmax(scores, axis=-1)  # (B, 1, S)
    context = weights @ keys                   # (B, 1, H)
    return context, weights


if __name__ == "__main__":
    hidden_size = 16
    B, S, H = 2, 8, hidden_size

    key = jax.random.PRNGKey(0)
    kq, kk, k1, k2, k3, k4, k5, k6 = jax.random.split(key, 8)

    query = jax.random.normal(kq, (B, 1, H), dtype=jnp.float32)
    keys_ = jax.random.normal(kk, (B, S, H), dtype=jnp.float32)

    # Deterministic parameter init (nn.Linear shapes: weight (out, in), bias (out,))
    scale = 1.0 / jnp.sqrt(H)
    wa_w = jax.random.uniform(k1, (H, H), jnp.float32, -scale, scale)
    wa_b = jax.random.uniform(k2, (H,), jnp.float32, -scale, scale)
    ua_w = jax.random.uniform(k3, (H, H), jnp.float32, -scale, scale)
    ua_b = jax.random.uniform(k4, (H,), jnp.float32, -scale, scale)
    va_w = jax.random.uniform(k5, (1, H), jnp.float32, -scale, scale)
    va_b = jax.random.uniform(k6, (1,), jnp.float32, -scale, scale)
    params = (wa_w, wa_b, ua_w, ua_b, va_w, va_b)

    ctx, w = bahdanau_attention(query, keys_, params)
    jax.block_until_ready((ctx, w))

    ctx_ref, w_ref = bahdanau_reference(query, keys_, params)
    assert ctx.shape == (B, 1, H) and w.shape == (B, 1, S)
    # Tolerance loosened from 1e-5 because the softmax denominator now uses the
    # EUP approximate reciprocal (~1e-4 relative error).
    assert jnp.allclose(ctx, ctx_ref, atol=2e-3, rtol=2e-3)
    assert jnp.allclose(w, w_ref, atol=2e-3, rtol=2e-3)

    print("KERNEL_OK")
</pallas_src>

<mosaic_0001>
module attributes {stable_mosaic.version = 11 : i64} {
  func.func @_bahdanau_kernel(%arg0: i32, %arg1: memref<2x16xf32, #tpu.memory_space<vmem>>, %arg2: memref<2x8x16xf32, #tpu.memory_space<vmem>>, %arg3: memref<16x16xf32, #tpu.memory_space<vmem>>, %arg4: memref<1x16xf32, #tpu.memory_space<vmem>>, %arg5: memref<16x16xf32, #tpu.memory_space<vmem>>, %arg6: memref<1x16xf32, #tpu.memory_space<vmem>>, %arg7: memref<1x16xf32, #tpu.memory_space<vmem>>, %arg8: memref<1x1xf32, #tpu.memory_space<vmem>>, %arg9: memref<2x16xf32, #tpu.memory_space<vmem>>, %arg10: memref<2x8xf32, #tpu.memory_space<vmem>>) attributes {dimension_semantics = [#tpu.dimension_semantics<parallel>], iteration_bounds = array<i64: 1>, scalar_prefetch = 0 : i64, scratch_operands = 0 : i64, tpu.core_type = #tpu.core_type<tc>, window_params = [{transform_indices = @transform_0, window_bounds = array<i64: 2, 16>}, {transform_indices = @transform_1, window_bounds = array<i64: 2, 8, 16>}, {pipeline_mode = #tpu.pipeline_mode<synchronous>, transform_indices = @transform_2, window_bounds = array<i64: 16, 16>}, {pipeline_mode = #tpu.pipeline_mode<synchronous>, transform_indices = @transform_3, window_bounds = array<i64: 1, 16>}, {pipeline_mode = #tpu.pipeline_mode<synchronous>, transform_indices = @transform_4, window_bounds = array<i64: 16, 16>}, {pipeline_mode = #tpu.pipeline_mode<synchronous>, transform_indices = @transform_5, window_bounds = array<i64: 1, 16>}, {pipeline_mode = #tpu.pipeline_mode<synchronous>, transform_indices = @transform_6, window_bounds = array<i64: 1, 16>}, {pipeline_mode = #tpu.pipeline_mode<synchronous>, transform_indices = @transform_7, window_bounds = array<i64: 1, 1>}, {transform_indices = @transform_8, window_bounds = array<i64: 2, 16>}, {transform_indices = @transform_9, window_bounds = array<i64: 2, 8>}]} {
    %c0 = arith.constant 0 : index
    %c0_0 = arith.constant 0 : index
    %0 = vector.load %arg1[%c0, %c0_0] : memref<2x16xf32, #tpu.memory_space<vmem>>, vector<2x16xf32>
    %c0_1 = arith.constant 0 : index
    %c0_2 = arith.constant 0 : index
    %c0_3 = arith.constant 0 : index
    %1 = vector.load %arg2[%c0_1, %c0_2, %c0_3] : memref<2x8x16xf32, #tpu.memory_space<vmem>>, vector<2x8x16xf32>
    %c0_4 = arith.constant 0 : index
    %c0_5 = arith.constant 0 : index
    %2 = vector.load %arg3[%c0_4, %c0_5] : memref<16x16xf32, #tpu.memory_space<vmem>>, vector<16x16xf32>
    %cst = arith.constant dense<0.000000e+00> : vector<2x16xf32>
    %3 = tpu.matmul %0, %2, %cst {dimension_numbers = #tpu.dot_dimension_numbers<[1], [0], [0], [1], [0, 0, 1, 1], [], []>} : vector<2x16xf32>, vector<16x16xf32>, vector<2x16xf32> -> vector<2x16xf32>
    %c0_6 = arith.constant 0 : index
    %c0_7 = arith.constant 0 : index
    %4 = vector.load %arg4[%c0_6, %c0_7] : memref<1x16xf32, #tpu.memory_space<vmem>>, vector<1x16xf32>
    %5 = vector.broadcast %4 : vector<1x16xf32> to vector<2x16xf32>
    %6 = arith.addf %3, %5 : vector<2x16xf32>
    %7 = vector.shape_cast %1 : vector<2x8x16xf32> to vector<16x16xf32>
    %c0_8 = arith.constant 0 : index
    %c0_9 = arith.constant 0 : index
    %8 = vector.load %arg5[%c0_8, %c0_9] : memref<16x16xf32, #tpu.memory_space<vmem>>, vector<16x16xf32>
    %cst_10 = arith.constant dense<0.000000e+00> : vector<16x16xf32>
    %9 = tpu.matmul %7, %8, %cst_10 {dimension_numbers = #tpu.dot_dimension_numbers<[1], [0], [0], [1], [0, 0, 1, 1], [], []>} : vector<16x16xf32>, vector<16x16xf32>, vector<16x16xf32> -> vector<16x16xf32>
    %c0_11 = arith.constant 0 : index
    %c0_12 = arith.constant 0 : index
    %10 = vector.load %arg6[%c0_11, %c0_12] : memref<1x16xf32, #tpu.memory_space<vmem>>, vector<1x16xf32>
    %11 = vector.broadcast %10 : vector<1x16xf32> to vector<16x16xf32>
    %12 = arith.addf %9, %11 : vector<16x16xf32>
    %13 = vector.shape_cast %12 : vector<16x16xf32> to vector<2x8x16xf32>
    %14 = vector.shape_cast %6 : vector<2x16xf32> to vector<2x1x16xf32>
    %15 = vector.broadcast %14 : vector<2x1x16xf32> to vector<2x8x16xf32>
    %16 = arith.addf %13, %15 : vector<2x8x16xf32>
    %17 = math.tanh %16 : vector<2x8x16xf32>
    %c0_13 = arith.constant 0 : index
    %c0_14 = arith.constant 0 : index
    %18 = vector.load %arg7[%c0_13, %c0_14] : memref<1x16xf32, #tpu.memory_space<vmem>>, vector<1x16xf32>
    %19 = vector.shape_cast %18 : vector<1x16xf32> to vector<1x1x16xf32>
    %20 = vector.broadcast %19 : vector<1x1x16xf32> to vector<2x8x16xf32>
    %21 = arith.mulf %17, %20 : vector<2x8x16xf32>
    %cst_15 = arith.constant dense<0.000000e+00> : vector<2x8xf32>
    %22 = vector.multi_reduction <add>, %21, %cst_15 [2] : vector<2x8x16xf32> to vector<2x8xf32>
    %c0_16 = arith.constant 0 : index
    %c0_17 = arith.constant 0 : index
    %23 = vector.load %arg8[%c0_16, %c0_17] : memref<1x1xf32, #tpu.memory_space<vmem>>, vector<1x1xf32>
    %24 = vector.broadcast %23 : vector<1x1xf32> to vector<2x8xf32>
    %25 = arith.addf %22, %24 : vector<2x8xf32>
    %cst_18 = arith.constant dense<0xFF800000> : vector<2xf32>
    %26 = vector.multi_reduction <maximumf>, %25, %cst_18 [1] : vector<2x8xf32> to vector<2xf32>
    %27 = vector.shape_cast %26 : vector<2xf32> to vector<2x1xf32>
    %28 = vector.broadcast %27 : vector<2x1xf32> to vector<2x8xf32>
    %29 = arith.subf %25, %28 : vector<2x8xf32>
    %30 = math.exp %29 : vector<2x8xf32>
    %cst_19 = arith.constant dense<0.000000e+00> : vector<2xf32>
    %31 = vector.multi_reduction <add>, %30, %cst_19 [1] : vector<2x8xf32> to vector<2xf32>
    %32 = vector.shape_cast %31 : vector<2xf32> to vector<2x1xf32>
    %33 = tpu.reciprocal %32 {approx = true} : vector<2x1xf32> -> vector<2x1xf32>
    %34 = vector.broadcast %33 : vector<2x1xf32> to vector<2x8xf32>
    %35 = arith.mulf %30, %34 : vector<2x8xf32>
    %36 = vector.shape_cast %35 : vector<2x8xf32> to vector<2x1x8xf32>
    "tpu.trace_start"() <{level = 10 : i32, message = "bqs,bsh->bqh"}> : () -> ()
    %cst_20 = arith.constant dense<0.000000e+00> : vector<2x1x16xf32>
    %37 = tpu.matmul %36, %1, %cst_20 {dimension_numbers = #tpu.dot_dimension_numbers<[2], [1], [1], [2], [0, 0, 0, 1, 1, 2], [0], [0]>} : vector<2x1x8xf32>, vector<2x8x16xf32>, vector<2x1x16xf32> -> vector<2x1x16xf32>
    "tpu.trace_stop"() : () -> ()
    %38 = vector.shape_cast %37 : vector<2x1x16xf32> to vector<2x16xf32>
    %c0_21 = arith.constant 0 : index
    %c0_22 = arith.constant 0 : index
    %39 = vector.load %arg9[%c0_21, %c0_22] : memref<2x16xf32, #tpu.memory_space<vmem>>, vector<2x16xf32>
    tpu.vector_store %arg9[%c0_21, %c0_22], %38 {strides = array<i32>} : memref<2x16xf32, #tpu.memory_space<vmem>>, vector<2x16xf32>,
    %c0_23 = arith.constant 0 : index
    %c0_24 = arith.constant 0 : index
    %40 = vector.load %arg10[%c0_23, %c0_24] : memref<2x8xf32, #tpu.memory_space<vmem>>, vector<2x8xf32>
    tpu.vector_store %arg10[%c0_23, %c0_24], %35 {strides = array<i32>} : memref<2x8xf32, #tpu.memory_space<vmem>>, vector<2x8xf32>,
    return
  }
  func.func @transform_0(%arg0: i32) -> (i32, i32) {
    %c0_i32 = arith.constant 0 : i32
    %c0_i32_0 = arith.constant 0 : i32
    return %arg0, %c0_i32 : i32, i32
  }
  func.func @transform_1(%arg0: i32) -> (i32, i32, i32) {
    %c0_i32 = arith.constant 0 : i32
    %c0_i32_0 = arith.constant 0 : i32
    %c0_i32_1 = arith.constant 0 : i32
    return %arg0, %c0_i32, %c0_i32_0 : i32, i32, i32
  }
  func.func @transform_2(%arg0: i32) -> (i32, i32) {
    %c0_i32 = arith.constant 0 : i32
    %c0_i32_0 = arith.constant 0 : i32
    %c0_i32_1 = arith.constant 0 : i32
    return %c0_i32, %c0_i32_0 : i32, i32
  }
  func.func @transform_3(%arg0: i32) -> (i32, i32) {
    %c0_i32 = arith.constant 0 : i32
    %c0_i32_0 = arith.constant 0 : i32
    %c0_i32_1 = arith.constant 0 : i32
    return %c0_i32, %c0_i32_0 : i32, i32
  }
  func.func @transform_4(%arg0: i32) -> (i32, i32) {
    %c0_i32 = arith.constant 0 : i32
    %c0_i32_0 = arith.constant 0 : i32
    %c0_i32_1 = arith.constant 0 : i32
    return %c0_i32, %c0_i32_0 : i32, i32
  }
  func.func @transform_5(%arg0: i32) -> (i32, i32) {
    %c0_i32 = arith.constant 0 : i32
    %c0_i32_0 = arith.constant 0 : i32
    %c0_i32_1 = arith.constant 0 : i32
    return %c0_i32, %c0_i32_0 : i32, i32
  }
  func.func @transform_6(%arg0: i32) -> (i32, i32) {
    %c0_i32 = arith.constant 0 : i32
    %c0_i32_0 = arith.constant 0 : i32
    %c0_i32_1 = arith.constant 0 : i32
    return %c0_i32, %c0_i32_0 : i32, i32
  }
  func.func @transform_7(%arg0: i32) -> (i32, i32) {
    %c0_i32 = arith.constant 0 : i32
    %c0_i32_0 = arith.constant 0 : i32
    %c0_i32_1 = arith.constant 0 : i32
    return %c0_i32, %c0_i32_0 : i32, i32
  }
  func.func @transform_8(%arg0: i32) -> (i32, i32) {
    %c0_i32 = arith.constant 0 : i32
    %c0_i32_0 = arith.constant 0 : i32
    return %arg0, %c0_i32 : i32, i32
  }
  func.func @transform_9(%arg0: i32) -> (i32, i32) {
    %c0_i32 = arith.constant 0 : i32
    %c0_i32_0 = arith.constant 0 : i32
    return %arg0, %c0_i32 : i32, i32
  }
}

</mosaic_0001>

<bundles_post_ra>
// kernel: tpu_custom_call.1
= control target key start
LH: loop header
LB: loop body
LE: loop exit
PB: predicated region body
PF: predicated region fallthrough
CT: control target
= control target key end

     0   :  { %s585_s0 = inlined_call_operand.vmem [shape: f32[2,16], index: 0, kind: input, shape index: {}]   ;;  %s586_s1 = inlined_call_operand.hbm [shape: f32[2,8,16], index: 1, kind: input, shape index: {}]   ;;  %s587_s2 = inlined_call_operand.hbm [shape: f32[16,16], index: 2, kind: input, shape index: {}]   ;;  %s588_s3 = inlined_call_operand.vmem [shape: f32[1,16], index: 3, kind: input, shape index: {}]   ;;  %s589_s4 = inlined_call_operand.hbm [shape: f32[16,16], index: 4, kind: input, shape index: {}]   ;;  %s590_s5 = inlined_call_operand.vmem [shape: f32[1,16], index: 5, kind: input, shape index: {}]   ;;  %s591_s6 = inlined_call_operand.vmem [shape: f32[1,16], index: 6, kind: input, shape index: {}]   ;;  %s592_s7 = inlined_call_operand.<no memory space> [shape: f32[1,1], index: 7, kind: input, shape index: {}]   ;;  %s593_s8 = inlined_call_operand.hbm [shape: f32[2,16], index: 8, kind: output, shape index: {0}]   ;;  %s594_s9 = inlined_call_operand.hbm [shape: f32[2,8], index: 9, kind: output, shape index: {1}]  }
   0x1   :  { %v15_v0 = vstv %s592_s7 }
   0x2   :  { %16 = vst [vmem:[#allocation2] sm:$0x1] %v15_v0 }
   0x3   :  { %17 = vsyncpa [#allocation4], 0 }
   0x4   :  { %18 = vsyncpa [#allocation7], 0 }
   0x5   :  { %19 = vsyncpa [#allocation5], 0 }
   0x6   :  { %20 = vsyncpa [#allocation11], 0  ;;  %s40_s13 = sshll.u32 %s587_s2, 4  ;;  %s485_s14 = smov [#allocation6]   ;;  %s41_s13 = int_to_ptr.hbm [resolvable:$true] %s40_s13 }
   0x7   :  { %s42_s15 = sshll.u32 %s485_s14, 4  ;;  %s27_s18 = sshll.u32 %s586_s1, 4  ;;  %s43_s15 = int_to_ptr.vmem [resolvable:$true] %s42_s15  ;;  %s28_s18 = int_to_ptr.hbm [resolvable:$true] %s27_s18 }
   0x8   :  { %s486_s19 = smov 128   ;;  %s487_s20 = smov 8  }
   0x9   :  { %48 = dma.hbm_to_vmem [thread:$0]  %s41_s13, 256, %s43_s15, [#allocation7], %s486_s19, %s486_s19, %s487_s20  }
   0xa   :  { %s488_s7 = smov [#allocation3]   ;;  %s55_s24 = sshll.u32 %s589_s4, 4  ;;  %s56_s24 = int_to_ptr.hbm [resolvable:$true] %s55_s24 }
   0xb   :  { %s29_s21 = sshll.u32 %s488_s7, 4  ;;  %s489_s2 = smov [#allocation8]   ;;  %s30_s21 = int_to_ptr.vmem [resolvable:$true] %s29_s21 }
   0xc   :  { %35 = dma.hbm_to_vmem [thread:$0]  %s28_s18, 256, %s30_s21, [#allocation4], %s486_s19, %s486_s19, %s487_s20  }
   0xd   :  { %s57_s25 = sshll.u32 %s489_s2, 4  ;;  %s58_s25 = int_to_ptr.vmem [resolvable:$true] %s57_s25 }
   0xe   :  { %63 = dma.hbm_to_vmem [thread:$0]  %s56_s24, 256, %s58_s25, [#allocation7], %s486_s19, %s486_s19, %s487_s20  }
   0xf   :  { %477 = dma.done.wait [#allocation4], 256  }
  0x10   :  { %478 = vsyncadd [#allocation4], 4294967040 }
  0x11   :  { %479 = dma.done.wait [#allocation7], 512  }
  0x12   :  { %480 = vsyncadd [#allocation7], 4294966784  ;;  %v86_v1 = vld [vmem:[#allocation6 + $0x8] sm:$0xff]  ;;  %v116_v2 = vld [vmem:[#allocation8 + $0x8] sm:$0xff]  ;;  %vm91_vm0 = vcmask 130048   ;;  %v490_v8 = vmov 0   ;;  %v183_v31 = vlaneseq }
  0x13   :  { %v85_v3 = vld [vmem:[#allocation6] sm:$0xff]  ;;  %109 = vmatpush.msra.mxu0 %v86_v1  ;;  %141 = vmatpush.msra.mxu1 %v116_v2  ;;  %v115_v4 = vld [vmem:[#allocation8] sm:$0xff]  ;;  %v84_v7 = vld [vmem:[#allocation3 + $0x8] sm:$0xff]  ;;  %vm187_vm1 = vcmask 1041409   ;;  %vm190_vm2 = vcmask 58368   ;;  %vm233_vm3 = vcmask 64512  }
  0x14   :  { %v82_v5 = vld [vmem:[%s585_s0] sm:$0x3]  ;;  %278 = vmatpush.msra.mxu3 %v84_v7  ;;  %340 = vset.pattern.permute.xlu1 %v490_v8  ;;  %v184_v33 = vand.u32 127, %v183_v31  ;;  %s311_s11 = sshll.u32 %s594_s9, 4  ;;  %s492_s12 = smov [#allocation9]   ;;  %vm288_vm4 = vcmask 123904   ;;  %s312_s11 = int_to_ptr.hbm [resolvable:$true] %s311_s11 }
  0x15   :  { %v83_v6 = vld [vmem:[#allocation3] sm:$0xff]  ;;  %110 = vmatpush.msra.mxu0 %v85_v3  ;;  %142 = vmatpush.msra.mxu1 %v115_v4  ;;  %v346_v9 = vld [vmem:[#allocation2] ss:$0 sm:$0xff]  ;;  %s298_s13 = sshll.u32 %s492_s12, 4  ;;  %s300_s16 = sshll.u32 %s593_s8, 4  ;;  %s299_s13 = int_to_ptr.vmem [resolvable:$true] %s298_s13  ;;  %s301_s16 = int_to_ptr.hbm [resolvable:$true] %s300_s16 }
  0x16   :  { %251 = vmatpush.msra.mxu2 %v83_v6  ;;  %327 = vmatmul.msk.f32.vlgmr.msra.gmra.mxu0 %vm91_vm0, %v82_v5  ;;  %v343_v10 = vld [vmem:[%s588_s3] ss:$0 sm:$0xff]  ;;  %s491_s3 = smov [#allocation10]  }
  0x17   :  { %328 = vmatmul.msk.f32.vlgmr.msra.gmra.mxu1 %vm91_vm0, %v83_v6  ;;  %341 = vset.pattern.permute.xlu2 %v490_v8  ;;  %v344_v11 = vld [vmem:[%s590_s5] ss:$0 sm:$0xff]  ;;  %s309_s5 = sshll.u32 %s491_s3, 4  ;;  %s310_s5 = int_to_ptr.vmem [resolvable:$true] %s309_s5 }
  0x18   :  { %342 = vset.pattern.permute.xlu0 %v490_v8  ;;  %176 = vperm.xlu1 %340, %v346_v9   ;;  %v345_v22 = vld [vmem:[%s591_s6] ss:$0 sm:$0xff] }
  0x1f   :  { %329 = vmatmul.msk.f32.gmra.mxu1 %vm91_vm0, %v84_v7 }
  0x8a   :  { %v177_v32 = vpop.permute.xlu1 %176 }
  0x93   :  { %v112_v12 = vpop.f32.mrf.mxu0 }
  0x94   :  { %v144_v13 = vpop.f32.mrf.mxu1  ;;  %v113_v14 = vadd.f32 %v343_v10, %v112_v12 }
  0x95   :  { %v145_v15 = vadd.f32 %v344_v11, %v144_v13 }
  0x96   :  { %v152_v16 = vperm.slane %v113_v14, 0  ;;  %v151_v17 = vrot.slane %v113_v14, 1 }
  0x98   :  { %v156_v18 = vadd.f32 %v152_v16, %v145_v15  ;;  %v153_v20 = vperm.slane %v151_v17, 0 }
  0x9a   :  { %347 = vtanh.f32 %v156_v18 }
  0x9c   :  { %v147_v19 = vpop.f32.mrf.mxu1 }
  0x9d   :  { %v148_v21 = vadd.f32 %v344_v11, %v147_v19 }
  0x9f   :  { %v157_v23 = vadd.f32 %v153_v20, %v148_v21 }
  0xa0   :  { %v348_v24 = vpop.eup %347 }
  0xa1   :  { %349 = vtanh.f32 %v157_v23  ;;  %v164_v25 = vmul.f32 %v348_v24, %v345_v22 }
  0xa3   :  { %v166_v26 = vsel %vm91_vm0, %v164_v25, 0.0 }
  0xa4   :  { %167 = vadd.xlane.f32.xlu0 %v166_v26 }
  0xa7   :  { %v350_v27 = vpop.eup %349 }
  0xa8   :  { %v165_v28 = vmul.f32 %v350_v27, %v345_v22 }
  0xaa   :  { %v169_v29 = vsel %vm91_vm0, %v165_v28, 0.0 }
  0xac   :  { %170 = vadd.xlane.f32.xlu0 %v169_v29 }
 0x117   :  { %v168_v30 = vpop.xlane.xlu0 %167 }
 0x118   :  { %v179_v34 = vadd.f32 %v177_v32, %v168_v30 }
 0x11a   :  { %v185_v37 = vperm.slane %v179_v34, %v184_v33 }
 0x11f   :  { %v171_v35 = vpop.xlane.xlu0 %170 }
 0x120   :  { %v180_v36 = vadd.f32 %v177_v32, %v171_v35 }
 0x122   :  { %v186_v38 = vperm.slane %v180_v36, %v184_v33 }
 0x124   :  { %v188_v39 = vsel %vm187_vm1, %v186_v38, %v185_v37 }
 0x125   :  { %v191_v40 = vsel %vm190_vm2, %v188_v39, -inf }
 0x126   :  { %192 = vmax.xlane.f32.xlu1 %v191_v40 }
 0x199   :  { %v193_v41 = vpop.xlane.xlu1 %192 }
 0x19a   :  { %v195_v42 = vperm.slane %v193_v41, 0  ;;  %v196_v43 = vperm.slane %v193_v41, 1 }
 0x19c   :  { %v199_v44 = vsub.f32 %v179_v34, %v195_v42  ;;  %v200_v46 = vsub.f32 %v180_v36, %v196_v43 }
 0x19e   :  { %v201_v45 = vmul.f32 1.442695, %v199_v44  ;;  %v203_v47 = vmul.f32 1.442695, %v200_v46 }
 0x1a0   :  { %351 = vpow2.f32 %v201_v45 }
 0x1a1   :  { %353 = vpow2.f32 %v203_v47 }
 0x1a6   :  { %v352_v48 = vpop.eup %351 }
 0x1a7   :  { %208 = vperm.xlu2 %341, %v352_v48   ;;  %v354_v49 = vpop.eup %353 }
 0x1af   :  { %211 = vperm.xlu2 %341, %v354_v49  }
 0x201   :  { %v209_v50 = vpop.permute.xlu2 %208 }
 0x202   :  { %v213_v52 = vperm.slane %v209_v50, %v184_v33 }
 0x209   :  { %v212_v51 = vpop.permute.xlu2 %211 }
 0x20a   :  { %v214_v53 = vperm.slane %v212_v51, %v184_v33 }
 0x20c   :  { %v215_v54 = vsel %vm187_vm1, %v214_v53, %v213_v52 }
 0x20d   :  { %v217_v55 = vsel %vm190_vm2, %v215_v54, 0.0 }
 0x20e   :  { %218 = vadd.xlane.f32.xlu0 %v217_v55 }
 0x281   :  { %v219_v56 = vpop.xlane.xlu0 %218 }
 0x282   :  { %355 = vrcp.f32 %v219_v56 }
 0x288   :  { %v356_v57 = vpop.eup %355 }
 0x289   :  { %v223_v58 = vperm.slane %v356_v57, 1  ;;  %v222_v59 = vperm.slane %v356_v57, 0 }
 0x28b   :  { %v227_v60 = vmul.f32 %v354_v49, %v223_v58  ;;  %v226_v61 = vmul.f32 %v352_v48, %v222_v59 }
 0x28d   :  { %258 = vperm.xlu2 %341, %v227_v60   ;;  %230 = vperm.xlu0 %342, %v226_v61  }
 0x2e7   :  { %v259_v62 = vpop.permute.xlu2 %258 }
 0x2e8   :  { %v260_v63 = vperm.slane %v259_v62, %v184_v33 }
 0x2ea   :  { %331 = vmatmul.msk.f32.vlgmr.msra.gmra.mxu3 %vm233_vm3, %v260_v63 }
 0x2ff   :  { %v231_v0 = vpop.permute.xlu0 %230 }
 0x300   :  { %v232_v1 = vperm.slane %v231_v0, %v184_v33 }
 0x302   :  { %v290_v2 = vsel %vm187_vm1, %v260_v63, %v232_v1  ;;  %330 = vmatmul.msk.f32.vlgmr.msra.gmra.mxu2 %vm233_vm3, %v232_v1 }
 0x303   :  { %292 = vst.msk [vmem:[#allocation10] sm:$0x3] %vm190_vm2, %v290_v2 }
 0x304   :  { %314 = dma.vmem_to_hbm [thread:$0]  %s310_s5, 32, %s312_s11, [#allocation11]  }
 0x36d   :  { %v280_v3 = vpop.f32.mrf.mxu3 }
 0x36e   :  { %v285_v4 = vrot.slane %v280_v3, 7 }
 0x385   :  { %v253_v5 = vpop.f32.mrf.mxu2 }
 0x386   :  { %v286_v6 = vsel %vm187_vm1, %v285_v4, %v253_v5 }
 0x387   :  { %289 = vst.msk [vmem:[#allocation9] sm:$0x3] %vm288_vm4, %v286_v6 }
 0x388   :  { %303 = dma.vmem_to_hbm [thread:$0]  %s299_s13, 32, %s301_s16, [#allocation5]  }
 0x389   :  { %481 = dma.done.wait [#allocation5], 32  }
 0x38a   :  { %482 = vsyncadd [#allocation5], 4294967264 }
 0x38b   :  { %483 = dma.done.wait [#allocation11], 32  }
 0x38c   :  { %484 = vsyncadd [#allocation11], 4294967264 }
 0x38d   :  { %323 = vsyncpa [#allocation4], 1 }
 0x38e   :  { %324 = vsyncpa [#allocation7], 1 }
 0x38f   :  { %325 = vsyncpa [#allocation5], 1 }
 0x390   :  { %326 = vsyncpa [#allocation11], 1 }

</bundles_post_ra>
